<compile_context>
chip_gen: v5e
topology: v5e:2x2
jax: 0.10.0
libtpu: 0.0.40
codegen_flags: <defaults>
</compile_context>

<pallas_src>
import functools

import jax
import jax.numpy as jnp
from jax.experimental import pallas as pl
from jax.experimental.pallas import tpu as pltpu

_LANE = 128       # lane width
_SUBLANE = 8      # sublane width
_PACK_ROWS = 8    # rows folded into one lane-dense output row
_MAX_TILE = 4096  # batch-tile cap (flat VMEM ~14 MB at this size)


def _round_up(x, m):
    return -(-x // m) * m


def _elementwise_dtype():
    """bf16 bias/ReLU on chips with a bf16 VALU (v6e/v7x); f32 on <= v5."""
    try:
        kind = jax.devices()[0].device_kind.lower()
    except Exception:
        return jnp.float32
    if any(v in kind for v in ("v2", "v3", "v4", "v5")):
        return jnp.float32
    return jnp.bfloat16


def _hidden_layers(z_ref, w1_ref, b1_ref, w2_ref, b2_ref, w3_ref, ew_dtype):
    """Fused Linear+ReLU x2 and the layer-3 matmul.

    bf16 MXU operands, f32 accumulation. Bias+ReLU run in `ew_dtype`.
    Returns the layer-3 pre-activation (batch_tile, pad_out) in f32.
    """
    z = z_ref[...].astype(jnp.bfloat16)
    h = jnp.dot(z, w1_ref[...], preferred_element_type=jnp.float32)
    h = jnp.maximum(h.astype(ew_dtype) + b1_ref[...].astype(ew_dtype), 0)
    h = jnp.dot(h.astype(jnp.bfloat16), w2_ref[...],
                preferred_element_type=jnp.float32)
    h = jnp.maximum(h.astype(ew_dtype) + b2_ref[...].astype(ew_dtype), 0)
    return jnp.dot(h.astype(jnp.bfloat16), w3_ref[...],
                   preferred_element_type=jnp.float32)


def _generator_kernel_packed(z_ref, w1_ref, b1_ref, w2_ref, b2_ref, w3_ref,
                             b3_ref, out_ref, pack_ref, *, out_dim, ew_dtype):
    """Packed-output path: out block is (batch_tile//8, 8*out_dim), lane-dense."""
    h = _hidden_layers(z_ref, w1_ref, b1_ref, w2_ref, b2_ref, w3_ref, ew_dtype)
    # Bias + tanh only on the live columns (no dead-lane EUP/VPU work).
    pack_ref[...] = jnp.tanh(h[:, :out_dim] + b3_ref[...])
    # Repack 8 consecutive rows of `out_dim` live columns into one lane-dense
    # output row: 8x smaller HBM writeback and an unmasked full-lane store.
    rows = out_ref.shape[0]                       # = batch_tile // _PACK_ROWS
    for r in range(_PACK_ROWS):
        out_ref[:, r * out_dim:(r + 1) * out_dim] = (
            pack_ref[pl.ds(r, rows, stride=_PACK_ROWS), :].astype(out_ref.dtype))


def _generator_kernel_padded(z_ref, w1_ref, b1_ref, w2_ref, b2_ref, w3_ref,
                             b3_ref, out_ref, *, ew_dtype):
    """Fallback path (out_dim not a multiple of 16): lane-padded output."""
    h = _hidden_layers(z_ref, w1_ref, b1_ref, w2_ref, b2_ref, w3_ref, ew_dtype)
    out_ref[...] = jnp.tanh(h + b3_ref[...]).astype(out_ref.dtype)


def _choose_batch_tile(batch):
    """Large tiles amortize ~0.35us/grid-step overhead and fill MXU rows, but
    keep an even grid count >= 2 once batch >= 128 so v7x's two TensorCores
    both get work via the 'parallel' grid axis."""
    if batch < 128:
        return _round_up(batch, _SUBLANE)          # single small tile
    steps = max(2, -(-batch // _MAX_TILE))
    if steps % 2:
        steps += 1                                  # even split across 2 TCs
    # Multiple of 64 so packed output blocks keep sublane-aligned row counts.
    return _round_up(-(-batch // steps), 64)


@functools.partial(jax.jit, static_argnames=("batch_tile",))
def generator_forward(z, w1, b1, w2, b2, w3, b3, *, batch_tile=None):
    """Fused generator MLP as a Pallas kernel, tiled over the batch."""
    batch, latent_dim = z.shape
    h1 = w1.shape[1]
    h2 = w2.shape[1]
    out_dim = w3.shape[1]

    if batch_tile is None:
        batch_tile = _choose_batch_tile(batch)
    assert batch_tile % _SUBLANE == 0, "batch_tile must be a multiple of 8"

    padded_batch = _round_up(batch, batch_tile)
    if padded_batch != batch:
        z = jnp.pad(z, ((0, padded_batch - batch), (0, 0)))

    # Lane-pad W3 columns for the layer-3 MXU matmul only (costs no extra MXU
    # column tiles); bias/tanh/store touch only the live columns.
    pad_out = _round_up(out_dim, _LANE)
    w3p = jnp.pad(w3, ((0, 0), (0, pad_out - out_dim))) if pad_out != out_dim else w3

    # bf16 MXU operands, cast once here; f32 accumulation in-kernel. z is cast
    # in-kernel (a standalone wrapper astype would add an HBM round trip; if an
    # upstream producer already emits bf16 z, the in-kernel cast is a no-op).
    w1b = w1.astype(jnp.bfloat16)
    w2b = w2.astype(jnp.bfloat16)
    w3b = w3p.astype(jnp.bfloat16)

    ew_dtype = _elementwise_dtype()

    use_pack = (out_dim < _LANE
                and (out_dim * _PACK_ROWS) % _LANE == 0
                and batch_tile % _PACK_ROWS == 0
                and (padded_batch == batch_tile
                     or (batch_tile // _PACK_ROWS) % _SUBLANE == 0))

    grid = (padded_batch // batch_tile,)

    # Constant index_maps => weights/biases stay resident in VMEM across grid
    # steps (Pallas does not re-DMA blocks whose index is unchanged).
    w_spec = lambda shape: pl.BlockSpec(shape, lambda i: (0, 0))
    in_specs = [
        pl.BlockSpec((batch_tile, latent_dim), lambda i: (i, 0)),   # z tile
        w_spec((latent_dim, h1)), w_spec((1, h1)),                  # w1, b1
        w_spec((h1, h2)), w_spec((1, h2)),                          # w2, b2
        w_spec((h2, pad_out)),                                      # w3 (lane-padded)
    ]

    if use_pack:
        kernel = functools.partial(_generator_kernel_packed,
                                   out_dim=out_dim, ew_dtype=ew_dtype)
        in_specs.append(w_spec((1, out_dim)))                       # b3 (live cols)
        b3k = b3
        out_cols = out_dim * _PACK_ROWS                             # multiple of 128
        out_shape = jax.ShapeDtypeStruct(
            (padded_batch // _PACK_ROWS, out_cols), jnp.float32)
        out_specs = pl.BlockSpec((batch_tile // _PACK_ROWS, out_cols),
                                 lambda i: (i, 0))
        scratch_shapes = [pltpu.VMEM((batch_tile, out_dim), jnp.float32)]
        out_bytes = padded_batch * out_dim * 4
        transcendentals = padded_batch * out_dim
    else:
        kernel = functools.partial(_generator_kernel_padded, ew_dtype=ew_dtype)
        in_specs.append(w_spec((1, pad_out)))                       # b3 (lane-padded)
        b3k = (jnp.pad(b3, ((0, 0), (0, pad_out - out_dim)))
               if pad_out != out_dim else b3)
        out_shape = jax.ShapeDtypeStruct((padded_batch, pad_out), jnp.float32)
        out_specs = pl.BlockSpec((batch_tile, pad_out), lambda i: (i, 0))
        scratch_shapes = []
        out_bytes = padded_batch * pad_out * 4
        transcendentals = padded_batch * pad_out

    flops = 2 * padded_batch * (latent_dim * h1 + h1 * h2 + h2 * pad_out)
    bytes_accessed = (
        padded_batch * latent_dim * z.dtype.itemsize       # z stream
        + (latent_dim * h1 + h1 * h2 + h2 * pad_out) * 2   # resident bf16 weights
        + (h1 + h2 + out_dim) * 4                           # f32 biases
        + out_bytes)                                        # lane-dense output

    out = pl.pallas_call(
        kernel,
        out_shape=out_shape,
        grid_spec=pltpu.PrefetchScalarGridSpec(
            num_scalar_prefetch=0,
            grid=grid,
            in_specs=in_specs,
            out_specs=out_specs,
            scratch_shapes=scratch_shapes),
        compiler_params=pltpu.CompilerParams(
            dimension_semantics=("parallel",),
            vmem_limit_bytes=48 * 1024 * 1024),   # 4096-row tiles fit with headroom
        cost_estimate=pl.CostEstimate(
            flops=flops,
            transcendentals=transcendentals,
            bytes_accessed=bytes_accessed),
    )(z, w1b, b1, w2b, b2, w3b, b3k)

    if use_pack:
        # (padded_batch//8, 8*out_dim) -> (padded_batch, out_dim) is a free,
        # contiguous row-major reshape (no data movement), then slice the pad off.
        return out.reshape(padded_batch, out_dim)[:batch]
    return out[:batch, :out_dim]


def init_generator_params(key, latent_dim, output_dim):
    """Deterministic init matching PyTorch nn.Linear default (U[-1/sqrt(fan_in), +])."""
    dims = [(latent_dim, 128), (128, 256), (256, output_dim)]
    params = []
    for (fan_in, fan_out) in dims:
        key, kw, kb = jax.random.split(key, 3)
        bound = 1.0 / jnp.sqrt(float(fan_in))
        w = jax.random.uniform(kw, (fan_in, fan_out), jnp.float32, -bound, bound)
        b = jax.random.uniform(kb, (1, fan_out), jnp.float32, -bound, bound)
        params.extend([w, b])
    return tuple(params)


def reference_forward(z, w1, b1, w2, b2, w3, b3):
    h = jnp.maximum(z @ w1 + b1, 0.0)
    h = jnp.maximum(h @ w2 + b2, 0.0)
    return jnp.tanh(h @ w3 + b3)


if __name__ == "__main__":
    latent_dim = 32
    output_dim = 16
    batch = 64

    key = jax.random.PRNGKey(0)
    key, zkey = jax.random.split(key)
    z = jax.random.normal(zkey, (batch, latent_dim), jnp.float32)

    params = init_generator_params(key, latent_dim, output_dim)

    out = jax.block_until_ready(generator_forward(z, *params))
    ref = reference_forward(z, *params)

    assert out.shape == (batch, output_dim)
    # bf16 MXU operands (and bf16 bias/ReLU on v6e/v7x) vs pure-f32 reference.
    assert jnp.allclose(out, ref, atol=3e-2, rtol=3e-2), "mismatch vs reference"

    print("KERNEL_OK")
</pallas_src>

<mosaic_0001>
module attributes {stable_mosaic.version = 11 : i64} {
  func.func @_generator_kernel_packed(%arg0: i32, %arg1: memref<64x32xf32, #tpu.memory_space<vmem>>, %arg2: memref<32x128xbf16, #tpu.memory_space<vmem>>, %arg3: memref<1x128xf32, #tpu.memory_space<vmem>>, %arg4: memref<128x256xbf16, #tpu.memory_space<vmem>>, %arg5: memref<1x256xf32, #tpu.memory_space<vmem>>, %arg6: memref<256x128xbf16, #tpu.memory_space<vmem>>, %arg7: memref<1x16xf32, #tpu.memory_space<vmem>>, %arg8: memref<8x128xf32, #tpu.memory_space<vmem>>, %arg9: memref<64x16xf32, #tpu.memory_space<vmem>>) attributes {dimension_semantics = [#tpu.dimension_semantics<parallel>], iteration_bounds = array<i64: 1>, scalar_prefetch = 0 : i64, scratch_operands = 1 : i64, tpu.core_type = #tpu.core_type<tc>, window_params = [{transform_indices = @transform_0, window_bounds = array<i64: 64, 32>}, {pipeline_mode = #tpu.pipeline_mode<synchronous>, transform_indices = @transform_1, window_bounds = array<i64: 32, 128>}, {pipeline_mode = #tpu.pipeline_mode<synchronous>, transform_indices = @transform_2, window_bounds = array<i64: 1, 128>}, {pipeline_mode = #tpu.pipeline_mode<synchronous>, transform_indices = @transform_3, window_bounds = array<i64: 128, 256>}, {pipeline_mode = #tpu.pipeline_mode<synchronous>, transform_indices = @transform_4, window_bounds = array<i64: 1, 256>}, {pipeline_mode = #tpu.pipeline_mode<synchronous>, transform_indices = @transform_5, window_bounds = array<i64: 256, 128>}, {pipeline_mode = #tpu.pipeline_mode<synchronous>, transform_indices = @transform_6, window_bounds = array<i64: 1, 16>}, {transform_indices = @transform_7, window_bounds = array<i64: 8, 128>}]} {
    %c0 = arith.constant 0 : index
    %c0_0 = arith.constant 0 : index
    %0 = vector.load %arg1[%c0, %c0_0] : memref<64x32xf32, #tpu.memory_space<vmem>>, vector<64x32xf32>
    %1 = arith.truncf %0 : vector<64x32xf32> to vector<64x32xbf16>
    %c0_1 = arith.constant 0 : index
    %c0_2 = arith.constant 0 : index
    %2 = vector.load %arg2[%c0_1, %c0_2] : memref<32x128xbf16, #tpu.memory_space<vmem>>, vector<32x128xbf16>
    %cst = arith.constant dense<0.000000e+00> : vector<64x128xf32>
    %3 = tpu.matmul %1, %2, %cst {dimension_numbers = #tpu.dot_dimension_numbers<[1], [0], [0], [1], [0, 0, 1, 1], [], []>} : vector<64x32xbf16>, vector<32x128xbf16>, vector<64x128xf32> -> vector<64x128xf32>
    %4 = arith.truncf %3 : vector<64x128xf32> to vector<64x128xbf16>
    %c0_3 = arith.constant 0 : index
    %c0_4 = arith.constant 0 : index
    %5 = vector.load %arg3[%c0_3, %c0_4] : memref<1x128xf32, #tpu.memory_space<vmem>>, vector<1x128xf32>
    %6 = arith.truncf %5 : vector<1x128xf32> to vector<1x128xbf16>
    %7 = vector.broadcast %6 : vector<1x128xbf16> to vector<64x128xbf16>
    %8 = arith.addf %4, %7 : vector<64x128xbf16>
    %cst_5 = arith.constant 0.000000e+00 : bf16
    %9 = vector.broadcast %cst_5 : bf16 to vector<64x128xbf16>
    %10 = arith.maximumf %8, %9 : vector<64x128xbf16>
    %c0_6 = arith.constant 0 : index
    %c0_7 = arith.constant 0 : index
    %11 = vector.load %arg4[%c0_6, %c0_7] : memref<128x256xbf16, #tpu.memory_space<vmem>>, vector<128x256xbf16>
    %cst_8 = arith.constant dense<0.000000e+00> : vector<64x256xf32>
    %12 = tpu.matmul %10, %11, %cst_8 {dimension_numbers = #tpu.dot_dimension_numbers<[1], [0], [0], [1], [0, 0, 1, 1], [], []>} : vector<64x128xbf16>, vector<128x256xbf16>, vector<64x256xf32> -> vector<64x256xf32>
    %13 = arith.truncf %12 : vector<64x256xf32> to vector<64x256xbf16>
    %c0_9 = arith.constant 0 : index
    %c0_10 = arith.constant 0 : index
    %14 = vector.load %arg5[%c0_9, %c0_10] : memref<1x256xf32, #tpu.memory_space<vmem>>, vector<1x256xf32>
    %15 = arith.truncf %14 : vector<1x256xf32> to vector<1x256xbf16>
    %16 = vector.broadcast %15 : vector<1x256xbf16> to vector<64x256xbf16>
    %17 = arith.addf %13, %16 : vector<64x256xbf16>
    %cst_11 = arith.constant 0.000000e+00 : bf16
    %18 = vector.broadcast %cst_11 : bf16 to vector<64x256xbf16>
    %19 = arith.maximumf %17, %18 : vector<64x256xbf16>
    %c0_12 = arith.constant 0 : index
    %c0_13 = arith.constant 0 : index
    %20 = vector.load %arg6[%c0_12, %c0_13] : memref<256x128xbf16, #tpu.memory_space<vmem>>, vector<256x128xbf16>
    %cst_14 = arith.constant dense<0.000000e+00> : vector<64x128xf32>
    %21 = tpu.matmul %19, %20, %cst_14 {dimension_numbers = #tpu.dot_dimension_numbers<[1], [0], [0], [1], [0, 0, 1, 1], [], []>} : vector<64x256xbf16>, vector<256x128xbf16>, vector<64x128xf32> -> vector<64x128xf32>
    %22 = vector.extract_strided_slice %21 {offsets = [0, 0], sizes = [64, 16], strides = [1, 1]} : vector<64x128xf32> to vector<64x16xf32>
    %c0_15 = arith.constant 0 : index
    %c0_16 = arith.constant 0 : index
    %23 = vector.load %arg7[%c0_15, %c0_16] : memref<1x16xf32, #tpu.memory_space<vmem>>, vector<1x16xf32>
    %24 = vector.broadcast %23 : vector<1x16xf32> to vector<64x16xf32>
    %25 = arith.addf %22, %24 : vector<64x16xf32>
    %26 = math.tanh %25 : vector<64x16xf32>
    %c0_17 = arith.constant 0 : index
    %c0_18 = arith.constant 0 : index
    %27 = vector.load %arg9[%c0_17, %c0_18] : memref<64x16xf32, #tpu.memory_space<vmem>>, vector<64x16xf32>
    tpu.vector_store %arg9[%c0_17, %c0_18], %26 {strides = array<i32>} : memref<64x16xf32, #tpu.memory_space<vmem>>, vector<64x16xf32>,
    %c0_19 = arith.constant 0 : index
    %c0_20 = arith.constant 0 : index
    %28 = tpu.strided_load %arg9[%c0_19, %c0_20] {strides = array<i32: 8, 1>} : memref<64x16xf32, #tpu.memory_space<vmem>>, vector<8x16xf32>
    %c0_21 = arith.constant 0 : index
    %c0_22 = arith.constant 0 : index
    %29 = vector.load %arg8[%c0_21, %c0_22] : memref<8x128xf32, #tpu.memory_space<vmem>>, vector<8x16xf32>
    tpu.vector_store %arg8[%c0_21, %c0_22], %28 {strides = array<i32>} : memref<8x128xf32, #tpu.memory_space<vmem>>, vector<8x16xf32>,
    %c1 = arith.constant 1 : index
    %c0_23 = arith.constant 0 : index
    %30 = tpu.strided_load %arg9[%c1, %c0_23] {strides = array<i32: 8, 1>} : memref<64x16xf32, #tpu.memory_space<vmem>>, vector<8x16xf32>
    %c0_24 = arith.constant 0 : index
    %c16 = arith.constant 16 : index
    %31 = vector.load %arg8[%c0_24, %c16] : memref<8x128xf32, #tpu.memory_space<vmem>>, vector<8x16xf32>
    tpu.vector_store %arg8[%c0_24, %c16], %30 {strides = array<i32>} : memref<8x128xf32, #tpu.memory_space<vmem>>, vector<8x16xf32>,
    %c2 = arith.constant 2 : index
    %c0_25 = arith.constant 0 : index
    %32 = tpu.strided_load %arg9[%c2, %c0_25] {strides = array<i32: 8, 1>} : memref<64x16xf32, #tpu.memory_space<vmem>>, vector<8x16xf32>
    %c0_26 = arith.constant 0 : index
    %c32 = arith.constant 32 : index
    %33 = vector.load %arg8[%c0_26, %c32] : memref<8x128xf32, #tpu.memory_space<vmem>>, vector<8x16xf32>
    tpu.vector_store %arg8[%c0_26, %c32], %32 {strides = array<i32>} : memref<8x128xf32, #tpu.memory_space<vmem>>, vector<8x16xf32>,
    %c3 = arith.constant 3 : index
    %c0_27 = arith.constant 0 : index
    %34 = tpu.strided_load %arg9[%c3, %c0_27] {strides = array<i32: 8, 1>} : memref<64x16xf32, #tpu.memory_space<vmem>>, vector<8x16xf32>
    %c0_28 = arith.constant 0 : index
    %c48 = arith.constant 48 : index
    %35 = vector.load %arg8[%c0_28, %c48] : memref<8x128xf32, #tpu.memory_space<vmem>>, vector<8x16xf32>
    tpu.vector_store %arg8[%c0_28, %c48], %34 {strides = array<i32>} : memref<8x128xf32, #tpu.memory_space<vmem>>, vector<8x16xf32>,
    %c4 = arith.constant 4 : index
    %c0_29 = arith.constant 0 : index
    %36 = tpu.strided_load %arg9[%c4, %c0_29] {strides = array<i32: 8, 1>} : memref<64x16xf32, #tpu.memory_space<vmem>>, vector<8x16xf32>
    %c0_30 = arith.constant 0 : index
    %c64 = arith.constant 64 : index
    %37 = vector.load %arg8[%c0_30, %c64] : memref<8x128xf32, #tpu.memory_space<vmem>>, vector<8x16xf32>
    tpu.vector_store %arg8[%c0_30, %c64], %36 {strides = array<i32>} : memref<8x128xf32, #tpu.memory_space<vmem>>, vector<8x16xf32>,
    %c5 = arith.constant 5 : index
    %c0_31 = arith.constant 0 : index
    %38 = tpu.strided_load %arg9[%c5, %c0_31] {strides = array<i32: 8, 1>} : memref<64x16xf32, #tpu.memory_space<vmem>>, vector<8x16xf32>
    %c0_32 = arith.constant 0 : index
    %c80 = arith.constant 80 : index
    %39 = vector.load %arg8[%c0_32, %c80] : memref<8x128xf32, #tpu.memory_space<vmem>>, vector<8x16xf32>
    tpu.vector_store %arg8[%c0_32, %c80], %38 {strides = array<i32>} : memref<8x128xf32, #tpu.memory_space<vmem>>, vector<8x16xf32>,
    %c6 = arith.constant 6 : index
    %c0_33 = arith.constant 0 : index
    %40 = tpu.strided_load %arg9[%c6, %c0_33] {strides = array<i32: 8, 1>} : memref<64x16xf32, #tpu.memory_space<vmem>>, vector<8x16xf32>
    %c0_34 = arith.constant 0 : index
    %c96 = arith.constant 96 : index
    %41 = vector.load %arg8[%c0_34, %c96] : memref<8x128xf32, #tpu.memory_space<vmem>>, vector<8x16xf32>
    tpu.vector_store %arg8[%c0_34, %c96], %40 {strides = array<i32>} : memref<8x128xf32, #tpu.memory_space<vmem>>, vector<8x16xf32>,
    %c7 = arith.constant 7 : index
    %c0_35 = arith.constant 0 : index
    %42 = tpu.strided_load %arg9[%c7, %c0_35] {strides = array<i32: 8, 1>} : memref<64x16xf32, #tpu.memory_space<vmem>>, vector<8x16xf32>
    %c0_36 = arith.constant 0 : index
    %c112 = arith.constant 112 : index
    %43 = vector.load %arg8[%c0_36, %c112] : memref<8x128xf32, #tpu.memory_space<vmem>>, vector<8x16xf32>
    tpu.vector_store %arg8[%c0_36, %c112], %42 {strides = array<i32>} : memref<8x128xf32, #tpu.memory_space<vmem>>, vector<8x16xf32>,
    return
  }
  func.func @transform_0(%arg0: i32) -> (i32, i32) {
    %c0_i32 = arith.constant 0 : i32
    %c0_i32_0 = arith.constant 0 : i32
    return %arg0, %c0_i32 : i32, i32
  }
  func.func @transform_1(%arg0: i32) -> (i32, i32) {
    %c0_i32 = arith.constant 0 : i32
    %c0_i32_0 = arith.constant 0 : i32
    %c0_i32_1 = arith.constant 0 : i32
    return %c0_i32, %c0_i32_0 : i32, i32
  }
  func.func @transform_2(%arg0: i32) -> (i32, i32) {
    %c0_i32 = arith.constant 0 : i32
    %c0_i32_0 = arith.constant 0 : i32
    %c0_i32_1 = arith.constant 0 : i32
    return %c0_i32, %c0_i32_0 : i32, i32
  }
  func.func @transform_3(%arg0: i32) -> (i32, i32) {
    %c0_i32 = arith.constant 0 : i32
    %c0_i32_0 = arith.constant 0 : i32
    %c0_i32_1 = arith.constant 0 : i32
    return %c0_i32, %c0_i32_0 : i32, i32
  }
  func.func @transform_4(%arg0: i32) -> (i32, i32) {
    %c0_i32 = arith.constant 0 : i32
    %c0_i32_0 = arith.constant 0 : i32
    %c0_i32_1 = arith.constant 0 : i32
    return %c0_i32, %c0_i32_0 : i32, i32
  }
  func.func @transform_5(%arg0: i32) -> (i32, i32) {
    %c0_i32 = arith.constant 0 : i32
    %c0_i32_0 = arith.constant 0 : i32
    %c0_i32_1 = arith.constant 0 : i32
    return %c0_i32, %c0_i32_0 : i32, i32
  }
  func.func @transform_6(%arg0: i32) -> (i32, i32) {
    %c0_i32 = arith.constant 0 : i32
    %c0_i32_0 = arith.constant 0 : i32
    %c0_i32_1 = arith.constant 0 : i32
    return %c0_i32, %c0_i32_0 : i32, i32
  }
  func.func @transform_7(%arg0: i32) -> (i32, i32) {
    %c0_i32 = arith.constant 0 : i32
    %c0_i32_0 = arith.constant 0 : i32
    return %arg0, %c0_i32 : i32, i32
  }
}

</mosaic_0001>

<bundles_post_ra>
// kernel: generator_forward.1
= control target key start
LH: loop header
LB: loop body
LE: loop exit
PB: predicated region body
PF: predicated region fallthrough
CT: control target
= control target key end

     0   :  { %vm55_vm0 = vcmask 261120   ;;  %vm626_vm1 = vcmask 130048   ;;  %s914_s17 = smov 48   ;;  %s915_s18 = smov 16   ;;  %vm647_vm2 = vcmask 261248   ;;  %vm657_vm3 = vcmask 392448   ;;  %s1200_s1 = inlined_call_operand.vmem [shape: bf16[32,128], index: 1, kind: input, shape index: {}]   ;;  %s1201_s0 = inlined_call_operand.vmem [shape: f32[64,32], index: 0, kind: input, shape index: {}]   ;;  %s1202_s3 = inlined_call_operand.vmem [shape: bf16[128,256], index: 3, kind: input, shape index: {}]   ;;  %s1203_s2 = inlined_call_operand.vmem [shape: f32[1,128], index: 2, kind: input, shape index: {}]   ;;  %s1204_s5 = inlined_call_operand.vmem [shape: bf16[256,128], index: 5, kind: input, shape index: {}]   ;;  %s1205_s4 = inlined_call_operand.vmem [shape: f32[1,256], index: 4, kind: input, shape index: {}]   ;;  %s1206_s6 = inlined_call_operand.vmem [shape: f32[1,16], index: 6, kind: input, shape index: {}]   ;;  %s1207_s7 = inlined_call_operand.vmem [shape: f32[8,128], index: 7, kind: output, shape index: {}]  }
   0x1   :  { %v854_v0 = vld [vmem:[%s1200_s1 + $0x8] sm:$0xff]  ;;  %v853_v1 = vld [vmem:[%s1200_s1] sm:$0xff]  ;;  %v783_v6 = vld [vmem:[%s1202_s3 + $0x70] sm:$0xf]  ;;  %s916_s21 = smov 96   ;;  %s917_s22 = smov 64  }
   0x2   :  { %v27_v2 = vld [vmem:[%s1201_s0] sm:$0xff]  ;;  %74 = vmatpush.bf16.msra.mxu0 %v854_v0  ;;  %v28_v3 = vld [vmem:[%s1201_s0 + $0x8] sm:$0xff]  ;;  %887 = vmatpush.bf16.msra.mxu1 %v854_v0  ;;  %v870_v7 = vld [vmem:[%s1202_s3 + $0x74] sm:$0xf0]  ;;  %s918_s23 = smov 32   ;;  %s919_s24 = smov 112  }
   0x3   :  { %v31_v4 = vld [vmem:[%s1201_s0 + $0x20] sm:$0xff]  ;;  %v32_v5 = vld [vmem:[%s1201_s0 + $0x28] sm:$0xff]  ;;  %v784_v8 = vor.u32 %v870_v7, %v783_v6  ;;  %v869_v9 = vld [vmem:[%s1202_s3 + $0x74] sm:$0xf]  ;;  %v35_v12 = vpack.c.bf16 %v28_v3, %v27_v2  ;;  %vm667_vm4 = vcmask 523648   ;;  %vm677_vm5 = vcmask 654848  }
   0x4   :  { %v785_v10 = vld [vmem:[%s1202_s3 + $0x78] sm:$0xf0]  ;;  %v775_v11 = vld [vmem:[%s1202_s3 + $0x60] sm:$0xf]  ;;  %v37_v13 = vpack.c.bf16 %v32_v5, %v31_v4  ;;  %v868_v15 = vld [vmem:[%s1202_s3 + $0x64] sm:$0xf0] }
   0x5   :  { %v788_v14 = vor.u32 %v869_v9, %v785_v10  ;;  %v867_v16 = vld [vmem:[%s1202_s3 + $0x64] sm:$0xf]  ;;  %v777_v17 = vld [vmem:[%s1202_s3 + $0x68] sm:$0xf0]  ;;  %v776_v18 = vor.u32 %v868_v15, %v775_v11  ;;  %v767_v20 = vld [vmem:[%s1202_s3 + $0x50] sm:$0xf] }
   0x6   :  { %75 = vmatpush.bf16.msra.mxu0 %v853_v1  ;;  %888 = vmatpush.bf16.msra.mxu1 %v853_v1  ;;  %v780_v19 = vor.u32 %v867_v16, %v777_v17  ;;  %v866_v21 = vld [vmem:[%s1202_s3 + $0x54] sm:$0xf0]  ;;  %v865_v22 = vld [vmem:[%s1202_s3 + $0x54] sm:$0xf]  ;;  %v769_v23 = vld [vmem:[%s1202_s3 + $0x58] sm:$0xf0] }
   0x7   :  { %281 = vmatpush.bf16.msra.mxu2 %v788_v14  ;;  %v768_v24 = vor.u32 %v866_v21, %v767_v20  ;;  %v772_v25 = vor.u32 %v865_v22, %v769_v23  ;;  %v29_v26 = vld [vmem:[%s1201_s0 + $0x10] sm:$0xff]  ;;  %v30_v27 = vld [vmem:[%s1201_s0 + $0x18] sm:$0xff]  ;;  %v759_v32 = vld [vmem:[%s1202_s3 + $0x40] sm:$0xf]  ;;  %vm687_vm6 = vcmask 786048   ;;  %vm697_vm7 = vcmask 917248  }
   0x8   :  { %v33_v28 = vld [vmem:[%s1201_s0 + $0x30] sm:$0xff]  ;;  %v34_v29 = vld [vmem:[%s1201_s0 + $0x38] sm:$0xff]  ;;  %v36_v30 = vpack.c.bf16 %v30_v27, %v29_v26  ;;  %v864_v33 = vld [vmem:[%s1202_s3 + $0x44] sm:$0xf0]  ;;  %vm707_vm8 = vcmask 1048448  }
   0x9   :  { %721 = vmatmul.msk.bf16.vlgmr.msra.gmra.mxu0 %vm55_vm0, %v35_v12  ;;  %723 = vmatmul.msk.bf16.vlgmr.msra.gmra.mxu1 %vm55_vm0, %v37_v13  ;;  %v38_v31 = vpack.c.bf16 %v34_v29, %v33_v28  ;;  %v863_v34 = vld [vmem:[%s1202_s3 + $0x44] sm:$0xf]  ;;  %v760_v35 = vor.u32 %v864_v33, %v759_v32  ;;  %v761_v36 = vld [vmem:[%s1202_s3 + $0x48] sm:$0xf0]  ;;  %v751_v38 = vld [vmem:[%s1202_s3 + $0x30] sm:$0xf] }
   0xa   :  { %252 = vmatpush.bf16.msrb.mxu1 %v784_v8  ;;  %v764_v37 = vor.u32 %v863_v34, %v761_v36  ;;  %v862_v39 = vld [vmem:[%s1202_s3 + $0x34] sm:$0xf0]  ;;  %v861_v41 = vld [vmem:[%s1202_s3 + $0x34] sm:$0xf]  ;;  %v753_v42 = vld [vmem:[%s1202_s3 + $0x38] sm:$0xf0] }
   0xb   :  { %282 = vmatpush.bf16.msra.mxu2 %v780_v19  ;;  %v752_v40 = vor.u32 %v862_v39, %v751_v38  ;;  %v756_v43 = vor.u32 %v861_v41, %v753_v42  ;;  %v743_v44 = vld [vmem:[%s1202_s3 + $0x20] sm:$0xf]  ;;  %v860_v45 = vld [vmem:[%s1202_s3 + $0x24] sm:$0xf0]  ;;  %v859_v46 = vld [vmem:[%s1202_s3 + $0x24] sm:$0xf] }
   0xc   :  { %v744_v47 = vor.u32 %v860_v45, %v743_v44  ;;  %v745_v48 = vld [vmem:[%s1202_s3 + $0x28] sm:$0xf0]  ;;  %v735_v50 = vld [vmem:[%s1202_s3 + $0x10] sm:$0xf]  ;;  %v858_v51 = vld [vmem:[%s1202_s3 + $0x14] sm:$0xf0] }
   0xd   :  { %v748_v49 = vor.u32 %v859_v46, %v745_v48  ;;  %v857_v52 = vld [vmem:[%s1202_s3 + $0x14] sm:$0xf]  ;;  %v736_v53 = vor.u32 %v858_v51, %v735_v50  ;;  %v737_v54 = vld [vmem:[%s1202_s3 + $0x18] sm:$0xf0]  ;;  %v727_v56 = vld [vmem:[%s1202_s3] sm:$0xf] }
   0xe   :  { %253 = vmatpush.bf16.msrb.mxu1 %v776_v18  ;;  %v740_v55 = vor.u32 %v857_v52, %v737_v54  ;;  %v856_v57 = vld [vmem:[%s1202_s3 + $0x4] sm:$0xf0]  ;;  %v855_v58 = vld [vmem:[%s1202_s3 + $0x4] sm:$0xf]  ;;  %v729_v60 = vld [vmem:[%s1202_s3 + $0x8] sm:$0xf0] }
   0xf   :  { %283 = vmatpush.bf16.msra.mxu2 %v772_v25  ;;  %v728_v59 = vor.u32 %v856_v57, %v727_v56  ;;  %v732_v61 = vor.u32 %v855_v58, %v729_v60  ;;  %v105_v62 = vld [vmem:[%s1203_s2] sm:$0x1]  ;;  %v878_v29 = vld [vmem:[%s1204_s5 + $0x38] sm:$0xff]  ;;  %v877_v34 = vld [vmem:[%s1204_s5 + $0x30] sm:$0xff] }
  0x10   :  { %v106_v63 = vpack.c.bf16 %v105_v62, %v105_v62  ;;  %548 = vmatpush.bf16.msra.mxu3 %v878_v29  ;;  %v876_v51 = vld [vmem:[%s1204_s5 + $0x28] sm:$0xff]  ;;  %v883_v54 = vld [vmem:[%s1204_s5 + $0x60] sm:$0xff]  ;;  %v882_v56 = vld [vmem:[%s1204_s5 + $0x58] sm:$0xff] }
  0x11   :  { %v884_v52 = vld [vmem:[%s1204_s5 + $0x68] sm:$0xff]  ;;  %v873_v57 = vld [vmem:[%s1204_s5 + $0x10] sm:$0xff]  ;;  %v871_v62 = vld [vmem:[%s1204_s5] sm:$0xff] }
  0x12   :  { %254 = vmatpush.bf16.msrb.mxu1 %v768_v24  ;;  %v108_v0 = vpack.i.b16 %v106_v63, %v106_v63  ;;  %v881_v58 = vld [vmem:[%s1204_s5 + $0x50] sm:$0xff]  ;;  %v880_v60 = vld [vmem:[%s1204_s5 + $0x48] sm:$0xff]  ;;  %v879_v63 = vld [vmem:[%s1204_s5 + $0x40] sm:$0xff] }
  0x13   :  { %284 = vmatpush.bf16.msra.mxu2 %v764_v37 }
  0x14   :  { %v110_v3 = vperm.slane %v108_v0, 0  ;;  %549 = vmatpush.bf16.msra.mxu3 %v877_v34 }
  0x16   :  { %255 = vmatpush.bf16.msrb.mxu1 %v760_v35  ;;  %v119_v5 = vunpack.c.l.bf16 %v110_v3  ;;  %v885_v35 = vld [vmem:[%s1204_s5 + $0x70] sm:$0xff] }
  0x17   :  { %285 = vmatpush.bf16.msra.mxu2 %v756_v43 }
  0x18   :  { %550 = vmatpush.bf16.msra.mxu3 %v876_v51 }
  0x19   :  { %722 = vmatmul.msk.bf16.gmra.mxu0 %vm55_vm0, %v36_v30  ;;  %724 = vmatmul.msk.bf16.gmra.mxu1 %vm55_vm0, %v38_v31  ;;  %v886_v30 = vld [vmem:[%s1204_s5 + $0x78] sm:$0xff] }
  0x1a   :  { %256 = vmatpush.bf16.msrb.mxu1 %v752_v40  ;;  %577 = vmatpush.bf16.msrb.mxu0 %v886_v30 }
  0x1b   :  { %286 = vmatpush.bf16.msra.mxu2 %v748_v49 }
  0x1e   :  { %257 = vmatpush.bf16.msrb.mxu1 %v744_v47  ;;  %578 = vmatpush.bf16.msrb.mxu0 %v885_v35 }
  0x1f   :  { %287 = vmatpush.bf16.msra.mxu2 %v740_v55  ;;  %v874_v55 = vld [vmem:[%s1204_s5 + $0x18] sm:$0xff] }
  0x22   :  { %258 = vmatpush.bf16.msrb.mxu1 %v736_v53  ;;  %579 = vmatpush.bf16.msrb.mxu0 %v884_v52  ;;  %v875_v53 = vld [vmem:[%s1204_s5 + $0x20] sm:$0xff] }
  0x23   :  { %288 = vmatpush.bf16.msra.mxu2 %v732_v61  ;;  %551 = vmatpush.bf16.msra.mxu3 %v875_v53  ;;  %v318_v61 = vld [vmem:[%s1205_s4] sm:$0x3] }
  0x24   :  { %v320_v0 = vperm.slane %v318_v61, 0 }
  0x26   :  { %259 = vmatpush.bf16.msrb.mxu1 %v728_v59  ;;  %580 = vmatpush.bf16.msrb.mxu0 %v883_v54  ;;  %v872_v59 = vld [vmem:[%s1204_s5 + $0x8] sm:$0xff] }
  0x27   :  { %552 = vmatpush.bf16.msra.mxu3 %v874_v55 }
  0x2a   :  { %581 = vmatpush.bf16.msrb.mxu0 %v882_v56 }
  0x2b   :  { %553 = vmatpush.bf16.msra.mxu3 %v873_v57 }
  0x2e   :  { %582 = vmatpush.bf16.msrb.mxu0 %v881_v58 }
  0x2f   :  { %554 = vmatpush.bf16.msra.mxu3 %v872_v59 }
  0x32   :  { %583 = vmatpush.bf16.msrb.mxu0 %v880_v60 }
  0x33   :  { %555 = vmatpush.bf16.msra.mxu3 %v871_v62 }
  0x36   :  { %584 = vmatpush.bf16.msrb.mxu0 %v879_v63 }
  0x86   :  { %v77_v1 = vpop.f32.mrf.mxu0  ;;  %v87_v14 = vpop.f32.mrf.mxu1 }
  0x87   :  { %v97_v2 = vpack.c.bf16 %v77_v1, %v77_v1  ;;  %v101_v26 = vpack.c.bf16 %v87_v14, %v87_v14  ;;  %v321_v1 = vperm.slane %v318_v61, 1 }
  0x89   :  { %v111_v4 = vunpack.c.l.bf16 %v97_v2  ;;  %v115_v32 = vunpack.c.l.bf16 %v101_v26  ;;  %v324_v2 = vpack.c.bf16 %v321_v1, %v320_v0 }
  0x8b   :  { %v120_v8 = vadd.f32 %v119_v5, %v111_v4  ;;  %v124_v36 = vadd.f32 %v119_v5, %v115_v32  ;;  %v327_v3 = vunpack.c.h.b16 %v324_v2  ;;  %v326_v4 = vunpack.c.l.b16 %v324_v2 }
  0x8d   :  { %v144_v11 = vmax.f32 %v120_v8, 0.0  ;;  %v148_v38 = vmax.f32 %v124_v36, 0.0 }
  0x8e   :  { %v79_v6 = vpop.f32.mrf.mxu0  ;;  %v89_v20 = vpop.f32.mrf.mxu1 }
  0x8f   :  { %v98_v7 = vpack.c.bf16 %v79_v6, %v79_v6  ;;  %v102_v27 = vpack.c.bf16 %v89_v20, %v89_v20  ;;  %v329_v6 = vpack.c.b16 %v327_v3, %v327_v3 }
  0x91   :  { %v112_v9 = vunpack.c.l.bf16 %v98_v7  ;;  %v116_v33 = vunpack.c.l.bf16 %v102_v27  ;;  %v328_v7 = vpack.c.b16 %v326_v4, %v326_v4  ;;  %v335_v8 = vpack.i.b16 %v329_v6, %v329_v6 }
  0x93   :  { %v121_v10 = vadd.f32 %v119_v5, %v112_v9  ;;  %v125_v37 = vadd.f32 %v119_v5, %v116_v33  ;;  %v331_v9 = vpack.i.b16 %v328_v7, %v328_v7 }
  0x95   :  { %v145_v12 = vmax.f32 %v121_v10, 0.0  ;;  %v149_v39 = vmax.f32 %v125_v37, 0.0  ;;  %v333_v14 = vperm.slane %v331_v9, 0 }
  0x96   :  { %v82_v13 = vpop.f32.mrf.mxu0  ;;  %v92_v31 = vpop.f32.mrf.mxu1 }
  0x97   :  { %v152_v15 = vpack.c.bf16 %v145_v12, %v144_v11  ;;  %v99_v16 = vpack.c.bf16 %v82_v13, %v82_v13  ;;  %v103_v41 = vpack.c.bf16 %v92_v31, %v92_v31  ;;  %v154_v43 = vpack.c.bf16 %v149_v39, %v148_v38 }
  0x98   :  { %v337_v13 = vperm.slane %v335_v8, 0 }
  0x99   :  { %260 = vmatmul.bf16.vlgmr.msrb.gmra.mxu1 %v152_v15  ;;  %289 = vmatmul.bf16.vlgmr.msra.gmra.mxu2 %v152_v15  ;;  %v113_v17 = vunpack.c.l.bf16 %v99_v16  ;;  %v117_v44 = vunpack.c.l.bf16 %v103_v41 }
  0x9b   :  { %v122_v21 = vadd.f32 %v119_v5, %v113_v17  ;;  %v126_v46 = vadd.f32 %v119_v5, %v117_v44  ;;  %v1144_v17 = vunpack.c.l.bf16 %v337_v13 }
  0x9d   :  { %v146_v24 = vmax.f32 %v122_v21, 0.0  ;;  %v150_v48 = vmax.f32 %v126_v46, 0.0 }
  0x9e   :  { %v84_v18 = vpop.f32.mrf.mxu0  ;;  %v94_v40 = vpop.f32.mrf.mxu1 }
  0x9f   :  { %v100_v19 = vpack.c.bf16 %v84_v18, %v84_v18  ;;  %v104_v42 = vpack.c.bf16 %v94_v40, %v94_v40  ;;  %v1146_v18 = vunpack.c.l.bf16 %v333_v14 }
  0xa1   :  { %v114_v22 = vunpack.c.l.bf16 %v100_v19  ;;  %v118_v45 = vunpack.c.l.bf16 %v104_v42 }
  0xa3   :  { %v123_v23 = vadd.f32 %v119_v5, %v114_v22  ;;  %v127_v47 = vadd.f32 %v119_v5, %v118_v45 }
  0xa5   :  { %v147_v25 = vmax.f32 %v123_v23, 0.0  ;;  %v151_v49 = vmax.f32 %v127_v47, 0.0 }
  0xa7   :  { %v153_v28 = vpack.c.bf16 %v147_v25, %v146_v24  ;;  %v155_v50 = vpack.c.bf16 %v151_v49, %v150_v48 }
  0xa9   :  { %265 = vmatmul.bf16.gmra.mxu1 %v153_v28  ;;  %294 = vmatmul.bf16.gmra.mxu2 %v153_v28 }
  0xb9   :  { %270 = vmatmul.bf16.gmra.mxu1 %v154_v43  ;;  %299 = vmatmul.bf16.gmra.mxu2 %v154_v43 }
  0xc9   :  { %275 = vmatmul.bf16.gmra.mxu1 %v155_v50  ;;  %304 = vmatmul.bf16.gmra.mxu2 %v155_v50 }
 0x116   :  { %v261_v5 = vpop.f32.mrf.mxu1 }
 0x11c   :  { %v290_v10 = vpop.f32.mrf.mxu2 }
 0x11d   :  { %v310_v12 = vpack.c.bf16 %v290_v10, %v261_v5 }
 0x11e   :  { %v263_v11 = vpop.f32.mrf.mxu1 }
 0x11f   :  { %v338_v15 = vunpack.c.l.bf16 %v310_v12  ;;  %v339_v16 = vunpack.c.h.bf16 %v310_v12 }
 0x121   :  { %v357_v22 = vadd.f32 %v1144_v17, %v339_v16  ;;  %v356_v25 = vadd.f32 %v1146_v18, %v338_v15 }
 0x123   :  { %v397_v28 = vmax.f32 %v357_v22, 0.0  ;;  %v396_v30 = vmax.f32 %v356_v25, 0.0 }
 0x124   :  { %v292_v19 = vpop.f32.mrf.mxu2 }
 0x125   :  { %v311_v20 = vpack.c.bf16 %v292_v19, %v263_v11 }
 0x126   :  { %v266_v21 = vpop.f32.mrf.mxu1 }
 0x127   :  { %v340_v23 = vunpack.c.l.bf16 %v311_v20  ;;  %v341_v24 = vunpack.c.h.bf16 %v311_v20 }
 0x129   :  { %v359_v26 = vadd.f32 %v1144_v17, %v341_v24  ;;  %v358_v27 = vadd.f32 %v1146_v18, %v340_v23 }
 0x12b   :  { %v399_v29 = vmax.f32 %v359_v26, 0.0  ;;  %v398_v31 = vmax.f32 %v358_v27, 0.0 }
 0x12c   :  { %v295_v32 = vpop.f32.mrf.mxu2 }
 0x12d   :  { %v412_v33 = vpack.c.bf16 %v398_v31, %v396_v30  ;;  %v413_v34 = vpack.c.bf16 %v399_v29, %v397_v28  ;;  %v312_v36 = vpack.c.bf16 %v295_v32, %v266_v21  ;;  %v896_v32 = vld [vmem:[%s1206_s6] ss:$0 sm:$0xff]  ;;  %s913_s6 = smov 80  }
 0x12e   :  { %v268_v35 = vpop.f32.mrf.mxu1 }
 0x12f   :  { %556 = vmatmul.bf16.vlgmr.msra.gmra.mxu3 %v412_v33  ;;  %585 = vmatmul.bf16.vlgmr.msrb.gmra.mxu0 %v413_v34  ;;  %v342_v37 = vunpack.c.l.bf16 %v312_v36  ;;  %v343_v38 = vunpack.c.h.bf16 %v312_v36 }
 0x131   :  { %v360_v44 = vadd.f32 %v1146_v18, %v342_v37  ;;  %v361_v45 = vadd.f32 %v1144_v17, %v343_v38 }
 0x133   :  { %v400_v48 = vmax.f32 %v360_v44, 0.0  ;;  %v401_v50 = vmax.f32 %v361_v45, 0.0 }
 0x134   :  { %v297_v39 = vpop.f32.mrf.mxu2 }
 0x135   :  { %v313_v40 = vpack.c.bf16 %v297_v39, %v268_v35 }
 0x136   :  { %v271_v41 = vpop.f32.mrf.mxu1 }
 0x137   :  { %v344_v42 = vunpack.c.l.bf16 %v313_v40  ;;  %v345_v43 = vunpack.c.h.bf16 %v313_v40 }
 0x139   :  { %v362_v46 = vadd.f32 %v1146_v18, %v344_v42  ;;  %v363_v47 = vadd.f32 %v1144_v17, %v345_v43 }
 0x13b   :  { %v402_v49 = vmax.f32 %v362_v46, 0.0  ;;  %v403_v51 = vmax.f32 %v363_v47, 0.0 }
 0x13c   :  { %v300_v52 = vpop.f32.mrf.mxu2 }
 0x13d   :  { %v414_v53 = vpack.c.bf16 %v402_v49, %v400_v48  ;;  %v415_v54 = vpack.c.bf16 %v403_v51, %v401_v50  ;;  %v314_v55 = vpack.c.bf16 %v300_v52, %v271_v41 }
 0x13e   :  { %v273_v56 = vpop.f32.mrf.mxu1 }
 0x13f   :  { %561 = vmatmul.bf16.gmra.mxu3 %v414_v53  ;;  %590 = vmatmul.bf16.gmra.mxu0 %v415_v54  ;;  %v346_v57 = vunpack.c.l.bf16 %v314_v55  ;;  %v347_v58 = vunpack.c.h.bf16 %v314_v55 }
 0x141   :  { %v364_v63 = vadd.f32 %v1146_v18, %v346_v57  ;;  %v365_v0 = vadd.f32 %v1144_v17, %v347_v58 }
 0x143   :  { %v404_v4 = vmax.f32 %v364_v63, 0.0  ;;  %v405_v6 = vmax.f32 %v365_v0, 0.0 }
 0x144   :  { %v302_v59 = vpop.f32.mrf.mxu2 }
 0x145   :  { %v315_v60 = vpack.c.bf16 %v302_v59, %v273_v56 }
 0x146   :  { %v276_v3 = vpop.f32.mrf.mxu1 }
 0x147   :  { %v348_v61 = vunpack.c.l.bf16 %v315_v60  ;;  %v349_v62 = vunpack.c.h.bf16 %v315_v60 }
 0x149   :  { %v366_v1 = vadd.f32 %v1146_v18, %v348_v61  ;;  %v367_v2 = vadd.f32 %v1144_v17, %v349_v62 }
 0x14b   :  { %v406_v5 = vmax.f32 %v366_v1, 0.0  ;;  %v407_v7 = vmax.f32 %v367_v2, 0.0 }
 0x14c   :  { %v305_v8 = vpop.f32.mrf.mxu2 }
 0x14d   :  { %v416_v9 = vpack.c.bf16 %v406_v5, %v404_v4  ;;  %v417_v10 = vpack.c.bf16 %v407_v7, %v405_v6  ;;  %v316_v11 = vpack.c.bf16 %v305_v8, %v276_v3 }
 0x14e   :  { %v278_v14 = vpop.f32.mrf.mxu1 }
 0x14f   :  { %566 = vmatmul.bf16.gmra.mxu3 %v416_v9  ;;  %595 = vmatmul.bf16.gmra.mxu0 %v417_v10  ;;  %v350_v12 = vunpack.c.l.bf16 %v316_v11  ;;  %v351_v13 = vunpack.c.h.bf16 %v316_v11 }
 0x151   :  { %v368_v21 = vadd.f32 %v1146_v18, %v350_v12  ;;  %v369_v22 = vadd.f32 %v1144_v17, %v351_v13 }
 0x153   :  { %v408_v25 = vmax.f32 %v368_v21, 0.0  ;;  %v409_v27 = vmax.f32 %v369_v22, 0.0 }
 0x154   :  { %v307_v15 = vpop.f32.mrf.mxu2 }
 0x155   :  { %v317_v16 = vpack.c.bf16 %v307_v15, %v278_v14 }
 0x157   :  { %v352_v19 = vunpack.c.l.bf16 %v317_v16  ;;  %v353_v20 = vunpack.c.h.bf16 %v317_v16 }
 0x159   :  { %v370_v23 = vadd.f32 %v1146_v18, %v352_v19  ;;  %v371_v24 = vadd.f32 %v1144_v17, %v353_v20 }
 0x15b   :  { %v410_v26 = vmax.f32 %v370_v23, 0.0  ;;  %v411_v28 = vmax.f32 %v371_v24, 0.0 }
 0x15d   :  { %v418_v29 = vpack.c.bf16 %v410_v26, %v408_v25  ;;  %v419_v30 = vpack.c.bf16 %v411_v28, %v409_v27 }
 0x15f   :  { %571 = vmatmul.bf16.gmra.mxu3 %v418_v29  ;;  %600 = vmatmul.bf16.gmra.mxu0 %v419_v30 }
 0x1ac   :  { %v586_v31 = vpop.f32.mrf.mxu0 }
 0x1b2   :  { %v557_v33 = vpop.f32.mrf.mxu3 }
 0x1b3   :  { %v587_v34 = vadd.f32 %v586_v31, %v557_v33 }
 0x1b4   :  { %v588_v35 = vpop.f32.mrf.mxu0 }
 0x1b5   :  { %v610_v36 = vadd.f32 %v896_v32, %v587_v34 }
 0x1b7   :  { %897 = vtanh.f32 %v610_v36 }
 0x1ba   :  { %v559_v18 = vpop.f32.mrf.mxu3 }
 0x1bb   :  { %v589_v17 = vadd.f32 %v588_v35, %v559_v18 }
 0x1bc   :  { %v591_v37 = vpop.f32.mrf.mxu0 }
 0x1bd   :  { %v898_v38 = vpop.eup %897  ;;  %v611_v39 = vadd.f32 %v896_v32, %v589_v17 }
 0x1be   :  { %627 = vst.msk [vmem:[#allocation2] sm:$0xff] %vm626_vm1, %v898_v38 }
 0x1bf   :  { %899 = vtanh.f32 %v611_v39 }
 0x1c2   :  { %v562_v40 = vpop.f32.mrf.mxu3 }
 0x1c3   :  { %v592_v41 = vadd.f32 %v591_v37, %v562_v40 }
 0x1c4   :  { %v593_v42 = vpop.f32.mrf.mxu0 }
 0x1c5   :  { %v900_v43 = vpop.eup %899  ;;  %v612_v44 = vadd.f32 %v896_v32, %v592_v41 }
 0x1c6   :  { %628 = vst.msk [vmem:[#allocation2 + $0x8] sm:$0xff] %vm626_vm1, %v900_v43 }
 0x1c7   :  { %901 = vtanh.f32 %v612_v44 }
 0x1ca   :  { %v564_v45 = vpop.f32.mrf.mxu3 }
 0x1cb   :  { %v594_v46 = vadd.f32 %v593_v42, %v564_v45 }
 0x1cc   :  { %v596_v47 = vpop.f32.mrf.mxu0 }
 0x1cd   :  { %v902_v48 = vpop.eup %901  ;;  %v613_v49 = vadd.f32 %v896_v32, %v594_v46 }
 0x1ce   :  { %629 = vst.msk [vmem:[#allocation2 + $0x10] sm:$0xff] %vm626_vm1, %v902_v48 }
 0x1cf   :  { %903 = vtanh.f32 %v613_v49 }
 0x1d2   :  { %v567_v50 = vpop.f32.mrf.mxu3 }
 0x1d3   :  { %v597_v51 = vadd.f32 %v596_v47, %v567_v50 }
 0x1d4   :  { %v598_v54 = vpop.f32.mrf.mxu0 }
 0x1d5   :  { %v904_v52 = vpop.eup %903  ;;  %v614_v53 = vadd.f32 %v896_v32, %v597_v51 }
 0x1d6   :  { %630 = vst.msk [vmem:[#allocation2 + $0x18] sm:$0xff] %vm626_vm1, %v904_v52 }
 0x1d7   :  { %905 = vtanh.f32 %v614_v53 }
 0x1da   :  { %v569_v55 = vpop.f32.mrf.mxu3 }
 0x1db   :  { %v599_v56 = vadd.f32 %v598_v54, %v569_v55 }
 0x1dc   :  { %v601_v59 = vpop.f32.mrf.mxu0 }
 0x1dd   :  { %v906_v57 = vpop.eup %905  ;;  %v615_v58 = vadd.f32 %v896_v32, %v599_v56  ;;  %v680_v6 = vld [vmem:[#allocation2 + $0x5] ss:$8 sm:$0xf]  ;;  %v660_v7 = vld [vmem:[#allocation2 + $0x3] ss:$8 sm:$0xf] }
 0x1de   :  { %631 = vst.msk [vmem:[#allocation2 + $0x20] sm:$0xff] %vm626_vm1, %v906_v57  ;;  %v640_v12 = vld [vmem:[#allocation2 + $0x1] ss:$8 sm:$0xf] }
 0x1df   :  { %907 = vtanh.f32 %v615_v58  ;;  %v635_v15 = vld [vmem:[#allocation2] ss:$8 sm:$0xf]  ;;  %v690_v23 = vld [vmem:[#allocation2 + $0x6] ss:$8 sm:$0xf] }
 0x1e0   :  { %v670_v24 = vld [vmem:[#allocation2 + $0x4] ss:$8 sm:$0xf]  ;;  %v650_v27 = vld [vmem:[#allocation2 + $0x2] ss:$8 sm:$0xf] }
 0x1e1   :  { %v700_v30 = vld [vmem:[#allocation2 + $0x7] ss:$8 sm:$0xf] }
 0x1e2   :  { %v572_v60 = vpop.f32.mrf.mxu3 }
 0x1e3   :  { %v602_v61 = vadd.f32 %v601_v59, %v572_v60 }
 0x1e4   :  { %v603_v0 = vpop.f32.mrf.mxu0 }
 0x1e5   :  { %v908_v62 = vpop.eup %907  ;;  %v616_v63 = vadd.f32 %v896_v32, %v602_v61 }
 0x1e6   :  { %632 = vst.msk [vmem:[#allocation2 + $0x28] sm:$0xff] %vm626_vm1, %v908_v62 }
 0x1e7   :  { %909 = vtanh.f32 %v616_v63 }
 0x1ea   :  { %v574_v1 = vpop.f32.mrf.mxu3 }
 0x1eb   :  { %v604_v2 = vadd.f32 %v603_v0, %v574_v1 }
 0x1ed   :  { %v910_v3 = vpop.eup %909  ;;  %v617_v4 = vadd.f32 %v896_v32, %v604_v2 }
 0x1ee   :  { %633 = vst.msk [vmem:[#allocation2 + $0x30] sm:$0xff] %vm626_vm1, %v910_v3 }
 0x1ef   :  { %911 = vtanh.f32 %v617_v4 }
 0x1f5   :  { %v912_v5 = vpop.eup %911 }
 0x1f6   :  { %634 = vst.msk [vmem:[#allocation2 + $0x38] sm:$0xff] %vm626_vm1, %v912_v5 }
 0x1fd   :  { %v681_v8 = vld [vmem:[#allocation2 + $0x5] ss:$8 sm:$0xf0]  ;;  %v661_v9 = vld [vmem:[#allocation2 + $0x3] ss:$8 sm:$0xf0] }
 0x1fe   :  { %v682_v10 = vor.u32 %v681_v8, %v680_v6  ;;  %v662_v11 = vor.u32 %v661_v9, %v660_v7  ;;  %v641_v13 = vld [vmem:[#allocation2 + $0x1] ss:$8 sm:$0xf0]  ;;  %v636_v16 = vld [vmem:[#allocation2] ss:$8 sm:$0xf0] }
 0x1ff   :  { %v642_v14 = vor.u32 %v641_v13, %v640_v12  ;;  %v637_v19 = vor.u32 %v636_v16, %v635_v15  ;;  %v691_v20 = vld [vmem:[#allocation2 + $0x6] ss:$8 sm:$0xf0]  ;;  %v671_v21 = vld [vmem:[#allocation2 + $0x4] ss:$8 sm:$0xf0] }
 0x200   :  { %684 = vrot.lane.b32.xlu2 %v682_v10, %s913_s6  ;;  %664 = vrot.lane.b32.xlu1 %v662_v11, %s914_s17  ;;  %v651_v22 = vld [vmem:[#allocation2 + $0x2] ss:$8 sm:$0xf0]  ;;  %v692_v25 = vor.u32 %v691_v20, %v690_v23  ;;  %v672_v26 = vor.u32 %v671_v21, %v670_v24  ;;  %v701_v29 = vld [vmem:[#allocation2 + $0x7] ss:$8 sm:$0xf0] }
 0x201   :  { %644 = vrot.lane.b32.xlu0 %v642_v14, %s915_s18  ;;  %638 = vst.msk [vmem:[%s1207_s7] sm:$0xff] %vm626_vm1, %v637_v19  ;;  %v652_v28 = vor.u32 %v651_v22, %v650_v27  ;;  %v702_v31 = vor.u32 %v701_v29, %v700_v30 }
 0x208   :  { %694 = vrot.lane.b32.xlu2 %v692_v25, %s916_s21  ;;  %674 = vrot.lane.b32.xlu1 %v672_v26, %s917_s22 }
 0x209   :  { %654 = vrot.lane.b32.xlu0 %v652_v28, %s918_s23 }
 0x211   :  { %704 = vrot.lane.b32.xlu0 %v702_v31, %s919_s24 }
 0x25a   :  { %v685_v34 = vpop.permute.xlu2 %684 }
 0x262   :  { %v695_v18 = vpop.permute.xlu2 %694 }
 0x272   :  { %v665_v32 = vpop.permute.xlu1 %664 }
 0x273   :  { %v645_v33 = vpop.permute.xlu0 %644 }
 0x274   :  { %648 = vst.msk [vmem:[%s1207_s7] sm:$0xff] %vm647_vm2, %v645_v33 }
 0x27a   :  { %v675_v36 = vpop.permute.xlu1 %674 }
 0x27b   :  { %v655_v35 = vpop.permute.xlu0 %654 }
 0x27c   :  { %658 = vst.msk [vmem:[%s1207_s7] sm:$0xff] %vm657_vm3, %v655_v35 }
 0x27d   :  { %668 = vst.msk [vmem:[%s1207_s7] sm:$0xff] %vm667_vm4, %v665_v32 }
 0x27e   :  { %678 = vst.msk [vmem:[%s1207_s7] sm:$0xff] %vm677_vm5, %v675_v36 }
 0x27f   :  { %688 = vst.msk [vmem:[%s1207_s7] sm:$0xff] %vm687_vm6, %v685_v34 }
 0x280   :  { %698 = vst.msk [vmem:[%s1207_s7] sm:$0xff] %vm697_vm7, %v695_v18 }
 0x283   :  { %v705_v17 = vpop.permute.xlu0 %704 }
 0x284   :  { %708 = vst.msk [vmem:[%s1207_s7] sm:$0xff] %vm707_vm8, %v705_v17 }

</bundles_post_ra>
